<compile_context>
chip_gen: v5e
topology: v5e:2x2
jax: 0.10.0
libtpu: 0.0.40
codegen_flags: <defaults>
</compile_context>

<pallas_src>
import functools

import jax
import jax.numpy as jnp
from jax import lax
from jax.experimental import pallas as pl
from jax.experimental.pallas import tpu as pltpu

LEAKY_SLOPE = 0.02


def _leaky_relu(x):
    # max(x, a*x) == LeakyReLU(a) exactly for 0 < a < 1, and it is one VALU
    # op cheaper per element than where(x > 0, x, a*x).
    return jnp.maximum(x, LEAKY_SLOPE * x)


def _round_up(n, m):
    return ((n + m - 1) // m) * m


def _cdiv(a, b):
    return -(-a // b)


def _discriminator_kernel(x_ref, w1_ref, b1_ref, w2_ref, b2_ref, w3_ref,
                          b3_ref, o_ref, *, chunk):
    """One batch tile of the MLP, batch laid out along lanes.

    Shapes inside the kernel (TB = lane tile of batch rows, C = chunk):
      x_ref : (1, TB)    f32   input scalars, lane-dense
      w1_ref: (128, 1)   f32   Linear(1,128) weight (out, in)
      b1_ref: (128, 1)   f32
      w2_ref: (64, 128)  bf16  Linear(128,64) weight (out, in)
      b2_ref: (64, 1)    f32
      w3_ref: (64, 1)    f32   Linear(64,1) weight as a column
      b3_ref: (1, 1)     f32
      o_ref : (1, TB)    f32   lane-dense output
    """
    # Weights are tiny; hoist their loads out of the chunk loop.
    w1 = w1_ref[...]            # (128, 1) f32
    b1 = b1_ref[...]            # (128, 1) f32
    w2 = w2_ref[...]            # (64, 128) bf16
    b2 = b2_ref[...]            # (64, 1) f32
    w3 = w3_ref[...]            # (64, 1) f32
    b3 = b3_ref[...]            # (1, 1) f32

    num_chunks = x_ref.shape[1] // chunk

    def body(c, carry):
        off = pl.multiple_of(c * chunk, chunk)
        x = x_ref[:, pl.ds(off, chunk)]                        # (1, C) f32

        # Layer 1: Linear(1, 128).  A K=1 matmul wastes a full MXU push, so
        # do it as a VPU broadcast multiply: h1[f, b] = w1[f] * x[b] + b1[f].
        h1 = _leaky_relu(w1 * x + b1)                          # (128, C) f32

        # Layer 2: Linear(128, 64) — the only real matmul.  bf16 operands on
        # the MXU with f32 accumulation; elementwise math stays in f32.
        h2 = jnp.dot(w2, h1.astype(jnp.bfloat16),
                     preferred_element_type=jnp.float32)       # (64, C) f32
        h2 = _leaky_relu(h2 + b2)

        # Layer 3: Linear(64, 1).  An N=1 matmul also wastes an MXU push; do
        # it as a VPU multiply + XLU sublane reduction.  Result stays
        # lane-dense (1, C) so the store is an unmasked full-lane vst.
        out = jnp.sum(h2 * w3, axis=0, keepdims=True) + b3     # (1, C)
        o_ref[:, pl.ds(off, chunk)] = out.astype(o_ref.dtype)
        return carry

    # Unrolled chunk loop: keeps per-chunk intermediates near the 64-vreg
    # file instead of round-tripping a (128, TB) f32 tensor through VMEM.
    lax.fori_loop(0, num_chunks, body, None, unroll=True)


def _choose_tiling(batch, tile, chunk):
    """Balanced, chunk-aligned batch tiles with an even tile count (>= 2):
    minimal tail padding, and the 'parallel' grid keeps both v7x TensorCores
    busy (no effect on single-TC v5e/v6e beyond negligible extra padding)."""
    tile = max(chunk, (int(tile) // chunk) * chunk)
    num_tiles = _cdiv(batch, tile)
    if num_tiles % 2:
        num_tiles += 1
    tb = _round_up(_cdiv(batch, num_tiles), chunk)
    return tb, num_tiles, num_tiles * tb


@functools.partial(jax.jit, static_argnames=("tile", "chunk"))
def discriminator_forward(x, w1, b1, w2, b2, w3, b3, tile=8192, chunk=256):
    """x: (B, 1) -> (B, 1) float32.  Params are in PyTorch (out, in) layout:
       w1 (128,1) b1 (128,)  w2 (64,128) b2 (64,)  w3 (1,64) b3 (1,)."""
    B = x.shape[0]
    x_flat = x.astype(jnp.float32).reshape(B)

    tb, num_tiles, b_pad = _choose_tiling(B, tile, chunk)

    if b_pad != B:
        x_flat = jnp.pad(x_flat, (0, b_pad - B))
    x_row = x_flat.reshape(1, b_pad)

    # Present params in the kernel's layout (batch along lanes).
    w1_col = w1.reshape(128, 1).astype(jnp.float32)
    b1_col = b1.reshape(128, 1).astype(jnp.float32)
    w2_bf16 = w2.astype(jnp.bfloat16)                      # (64, 128)
    b2_col = b2.reshape(64, 1).astype(jnp.float32)
    w3_col = w3.reshape(64, 1).astype(jnp.float32)         # (1,64) -> (64,1)
    b3_s = b3.reshape(1, 1).astype(jnp.float32)

    # Advisory cost hint for XLA scheduling around the custom call.
    flops_per_elem = 2 * 64 * 128 + 6 * 128 + 4 * 64 + 2
    param_bytes = 4 * (128 + 128 + 64 * 128 + 64 + 64 + 1)
    cost = pl.CostEstimate(flops=flops_per_elem * b_pad,
                           transcendentals=0,
                           bytes_accessed=8 * b_pad + param_bytes)

    out = pl.pallas_call(
        functools.partial(_discriminator_kernel, chunk=chunk),
        out_shape=jax.ShapeDtypeStruct((1, b_pad), jnp.float32),
        grid=(num_tiles,),
        in_specs=[
            pl.BlockSpec((1, tb), lambda i: (0, i)),       # x tile (streams)
            pl.BlockSpec((128, 1), lambda i: (0, 0)),      # w1 (resident)
            pl.BlockSpec((128, 1), lambda i: (0, 0)),      # b1
            pl.BlockSpec((64, 128), lambda i: (0, 0)),     # w2 (bf16)
            pl.BlockSpec((64, 1), lambda i: (0, 0)),       # b2
            pl.BlockSpec((64, 1), lambda i: (0, 0)),       # w3
            pl.BlockSpec((1, 1), lambda i: (0, 0)),        # b3
        ],
        out_specs=pl.BlockSpec((1, tb), lambda i: (0, i)),
        compiler_params=pltpu.CompilerParams(
            dimension_semantics=("parallel",)),
        cost_estimate=cost,
    )(x_row, w1_col, b1_col, w2_bf16, b2_col, w3_col, b3_s)

    out = out.reshape(b_pad, 1)
    if b_pad != B:
        out = out[:B]
    return out


def init_params(key):
    """PyTorch nn.Linear default init, weights stored as (out_features,
    in_features), biases as (out_features,)."""
    ks = jax.random.split(key, 6)

    def lin(kw, kb, fan_in, fan_out):
        bound = 1.0 / jnp.sqrt(jnp.float32(fan_in))
        w = jax.random.uniform(kw, (fan_out, fan_in), jnp.float32, -bound, bound)
        b = jax.random.uniform(kb, (fan_out,), jnp.float32, -bound, bound)
        return w, b

    w1, b1 = lin(ks[0], ks[1], 1, 128)
    w2, b2 = lin(ks[2], ks[3], 128, 64)
    w3, b3 = lin(ks[4], ks[5], 64, 1)
    return w1, b1, w2, b2, w3, b3


def reference_forward(x, w1, b1, w2, b2, w3, b3):
    """Pure-JAX f32 reference (matches the PyTorch module exactly)."""
    x = x.astype(jnp.float32)
    h1 = _leaky_relu(x @ w1.T + b1)
    h2 = _leaky_relu(h1 @ w2.T + b2)
    return h2 @ w3.T + b3


def reference_forward_bf16_mm(x, w1, b1, w2, b2, w3, b3):
    """Reference with the same bf16-operand / f32-accumulate middle matmul
    that the kernel uses (tight numerical comparison target)."""
    x = x.astype(jnp.float32)
    h1 = _leaky_relu(x @ w1.T + b1)
    h2 = jnp.dot(h1.astype(jnp.bfloat16), w2.astype(jnp.bfloat16).T,
                 preferred_element_type=jnp.float32) + b2
    h2 = _leaky_relu(h2)
    return h2 @ w3.T + b3


if __name__ == "__main__":
    key = jax.random.PRNGKey(0)
    k_params, k_x = jax.random.split(key)
    params = init_params(k_params)

    # Exercise: tiny batch (heavy padding path), mid batch, and a multi-tile
    # grid with balanced tiles (B=5000 -> 2 tiles of 2560 lanes).
    for B in (8, 300, 5000):
        kx = jax.random.fold_in(k_x, B)
        x = jax.random.normal(kx, (B, 1), dtype=jnp.float32)

        out = jax.block_until_ready(discriminator_forward(x, *params))
        assert out.shape == (B, 1), out.shape

        ref_bf16 = reference_forward_bf16_mm(x, *params)
        ref_f32 = reference_forward(x, *params)
        assert jnp.allclose(out, ref_bf16, atol=1e-3, rtol=1e-3), (
            f"mismatch vs bf16-matmul reference at B={B}: "
            f"max err {jnp.max(jnp.abs(out - ref_bf16))}")
        assert jnp.allclose(out, ref_f32, atol=5e-2, rtol=5e-2), (
            f"mismatch vs f32 reference at B={B}: "
            f"max err {jnp.max(jnp.abs(out - ref_f32))}")

    print("KERNEL_OK")
</pallas_src>

<mosaic_0001>
module attributes {stable_mosaic.version = 11 : i64} {
  func.func @_discriminator_kernel(%arg0: i32, %arg1: memref<1x256xf32, #tpu.memory_space<vmem>>, %arg2: memref<128x1xf32, #tpu.memory_space<vmem>>, %arg3: memref<128x1xf32, #tpu.memory_space<vmem>>, %arg4: memref<64x128xbf16, #tpu.memory_space<vmem>>, %arg5: memref<64x1xf32, #tpu.memory_space<vmem>>, %arg6: memref<64x1xf32, #tpu.memory_space<vmem>>, %arg7: memref<1x1xf32, #tpu.memory_space<vmem>>, %arg8: memref<1x256xf32, #tpu.memory_space<vmem>>) attributes {dimension_semantics = [#tpu.dimension_semantics<parallel>], iteration_bounds = array<i64: 2>, scalar_prefetch = 0 : i64, scratch_operands = 0 : i64, tpu.core_type = #tpu.core_type<tc>, window_params = [{transform_indices = @transform_0, window_bounds = array<i64: 1, 256>}, {pipeline_mode = #tpu.pipeline_mode<synchronous>, transform_indices = @transform_1, window_bounds = array<i64: 128, 1>}, {pipeline_mode = #tpu.pipeline_mode<synchronous>, transform_indices = @transform_2, window_bounds = array<i64: 128, 1>}, {pipeline_mode = #tpu.pipeline_mode<synchronous>, transform_indices = @transform_3, window_bounds = array<i64: 64, 128>}, {pipeline_mode = #tpu.pipeline_mode<synchronous>, transform_indices = @transform_4, window_bounds = array<i64: 64, 1>}, {pipeline_mode = #tpu.pipeline_mode<synchronous>, transform_indices = @transform_5, window_bounds = array<i64: 64, 1>}, {pipeline_mode = #tpu.pipeline_mode<synchronous>, transform_indices = @transform_6, window_bounds = array<i64: 1, 1>}, {transform_indices = @transform_7, window_bounds = array<i64: 1, 256>}]} {
    %c0 = arith.constant 0 : index
    %c0_0 = arith.constant 0 : index
    %0 = vector.load %arg2[%c0, %c0_0] : memref<128x1xf32, #tpu.memory_space<vmem>>, vector<128x1xf32>
    %c0_1 = arith.constant 0 : index
    %c0_2 = arith.constant 0 : index
    %1 = vector.load %arg3[%c0_1, %c0_2] : memref<128x1xf32, #tpu.memory_space<vmem>>, vector<128x1xf32>
    %c0_3 = arith.constant 0 : index
    %c0_4 = arith.constant 0 : index
    %2 = vector.load %arg4[%c0_3, %c0_4] : memref<64x128xbf16, #tpu.memory_space<vmem>>, vector<64x128xbf16>
    %c0_5 = arith.constant 0 : index
    %c0_6 = arith.constant 0 : index
    %3 = vector.load %arg5[%c0_5, %c0_6] : memref<64x1xf32, #tpu.memory_space<vmem>>, vector<64x1xf32>
    %c0_7 = arith.constant 0 : index
    %c0_8 = arith.constant 0 : index
    %4 = vector.load %arg6[%c0_7, %c0_8] : memref<64x1xf32, #tpu.memory_space<vmem>>, vector<64x1xf32>
    %c0_9 = arith.constant 0 : index
    %c0_10 = arith.constant 0 : index
    %5 = vector.load %arg7[%c0_9, %c0_10] : memref<1x1xf32, #tpu.memory_space<vmem>>, vector<1x1xf32>
    %c0_i32 = arith.constant 0 : i32
    %c256_i32 = arith.constant 256 : i32
    %6 = arith.muli %c0_i32, %c256_i32 : i32
    %7 = tpu.assume_multiple %6, 256 : i32
    %c0_11 = arith.constant 0 : index
    %8 = arith.index_cast %7 : i32 to index
    %9 = vector.load %arg1[%c0_11, %8] : memref<1x256xf32, #tpu.memory_space<vmem>>, vector<1x256xf32>
    %10 = vector.broadcast %0 : vector<128x1xf32> to vector<128x256xf32>
    %11 = vector.broadcast %9 : vector<1x256xf32> to vector<128x256xf32>
    %12 = arith.mulf %10, %11 : vector<128x256xf32>
    %13 = vector.broadcast %1 : vector<128x1xf32> to vector<128x256xf32>
    %14 = arith.addf %12, %13 : vector<128x256xf32>
    %cst = arith.constant 2.000000e-02 : f32
    %15 = vector.broadcast %cst : f32 to vector<128x256xf32>
    %16 = arith.mulf %15, %14 : vector<128x256xf32>
    %17 = arith.maximumf %14, %16 : vector<128x256xf32>
    %18 = arith.truncf %17 : vector<128x256xf32> to vector<128x256xbf16>
    %cst_12 = arith.constant dense<0.000000e+00> : vector<64x256xf32>
    %19 = tpu.matmul %2, %18, %cst_12 {dimension_numbers = #tpu.dot_dimension_numbers<[1], [0], [0], [1], [0, 0, 1, 1], [], []>} : vector<64x128xbf16>, vector<128x256xbf16>, vector<64x256xf32> -> vector<64x256xf32>
    %20 = vector.broadcast %3 : vector<64x1xf32> to vector<64x256xf32>
    %21 = arith.addf %19, %20 : vector<64x256xf32>
    %cst_13 = arith.constant 2.000000e-02 : f32
    %22 = vector.broadcast %cst_13 : f32 to vector<64x256xf32>
    %23 = arith.mulf %22, %21 : vector<64x256xf32>
    %24 = arith.maximumf %21, %23 : vector<64x256xf32>
    %25 = vector.broadcast %4 : vector<64x1xf32> to vector<64x256xf32>
    %26 = arith.mulf %24, %25 : vector<64x256xf32>
    %cst_14 = arith.constant dense<0.000000e+00> : vector<256xf32>
    %27 = vector.multi_reduction <add>, %26, %cst_14 [0] : vector<64x256xf32> to vector<256xf32>
    %28 = vector.shape_cast %27 : vector<256xf32> to vector<1x256xf32>
    %29 = vector.broadcast %5 : vector<1x1xf32> to vector<1x256xf32>
    %30 = arith.addf %28, %29 : vector<1x256xf32>
    %c0_15 = arith.constant 0 : index
    %31 = arith.index_cast %7 : i32 to index
    %32 = vector.load %arg8[%c0_15, %31] : memref<1x256xf32, #tpu.memory_space<vmem>>, vector<1x256xf32>
    tpu.vector_store %arg8[%c0_15, %31], %30 {strides = array<i32>} : memref<1x256xf32, #tpu.memory_space<vmem>>, vector<1x256xf32>,
    %c1_i32 = arith.constant 1 : i32
    return
  }
  func.func @transform_0(%arg0: i32) -> (i32, i32) {
    %c0_i32 = arith.constant 0 : i32
    %c0_i32_0 = arith.constant 0 : i32
    return %c0_i32, %arg0 : i32, i32
  }
  func.func @transform_1(%arg0: i32) -> (i32, i32) {
    %c0_i32 = arith.constant 0 : i32
    %c0_i32_0 = arith.constant 0 : i32
    %c0_i32_1 = arith.constant 0 : i32
    return %c0_i32, %c0_i32_0 : i32, i32
  }
  func.func @transform_2(%arg0: i32) -> (i32, i32) {
    %c0_i32 = arith.constant 0 : i32
    %c0_i32_0 = arith.constant 0 : i32
    %c0_i32_1 = arith.constant 0 : i32
    return %c0_i32, %c0_i32_0 : i32, i32
  }
  func.func @transform_3(%arg0: i32) -> (i32, i32) {
    %c0_i32 = arith.constant 0 : i32
    %c0_i32_0 = arith.constant 0 : i32
    %c0_i32_1 = arith.constant 0 : i32
    return %c0_i32, %c0_i32_0 : i32, i32
  }
  func.func @transform_4(%arg0: i32) -> (i32, i32) {
    %c0_i32 = arith.constant 0 : i32
    %c0_i32_0 = arith.constant 0 : i32
    %c0_i32_1 = arith.constant 0 : i32
    return %c0_i32, %c0_i32_0 : i32, i32
  }
  func.func @transform_5(%arg0: i32) -> (i32, i32) {
    %c0_i32 = arith.constant 0 : i32
    %c0_i32_0 = arith.constant 0 : i32
    %c0_i32_1 = arith.constant 0 : i32
    return %c0_i32, %c0_i32_0 : i32, i32
  }
  func.func @transform_6(%arg0: i32) -> (i32, i32) {
    %c0_i32 = arith.constant 0 : i32
    %c0_i32_0 = arith.constant 0 : i32
    %c0_i32_1 = arith.constant 0 : i32
    return %c0_i32, %c0_i32_0 : i32, i32
  }
  func.func @transform_7(%arg0: i32) -> (i32, i32) {
    %c0_i32 = arith.constant 0 : i32
    %c0_i32_0 = arith.constant 0 : i32
    return %c0_i32, %arg0 : i32, i32
  }
}

</mosaic_0001>

<bundles_post_ra>
// kernel: discriminator_forward.1
= control target key start
LH: loop header
LB: loop body
LE: loop exit
PB: predicated region body
PF: predicated region fallthrough
CT: control target
= control target key end

     0   :  { %s1057_s26 = smov 0   ;;  %s1292_s0 = inlined_call_operand.vmem [shape: f32[1,512], index: 0, kind: input, shape index: {}]   ;;  %s1293_s1 = inlined_call_operand.vmem [shape: f32[128,1], index: 1, kind: input, shape index: {}]   ;;  %s1294_s2 = inlined_call_operand.vmem [shape: f32[128,1], index: 2, kind: input, shape index: {}]   ;;  %s1295_s3 = inlined_call_operand.vmem [shape: bf16[64,128], index: 3, kind: input, shape index: {}]   ;;  %s1296_s4 = inlined_call_operand.vmem [shape: f32[64,1], index: 4, kind: input, shape index: {}]   ;;  %s1297_s5 = inlined_call_operand.vmem [shape: f32[64,1], index: 5, kind: input, shape index: {}]   ;;  %s1298_s6 = inlined_call_operand.<no memory space> [shape: f32[1,1], index: 6, kind: input, shape index: {}]   ;;  %s1299_s7 = inlined_call_operand.vmem [shape: f32[1,512], index: 7, kind: output, shape index: {}]  }
   0x1   :  { %v12_v0 = vstv %s1298_s6 }
   0x2   :  { %13 = vst [vmem:[#allocation2] sm:$0x1] %v12_v0 }
   0x3 LB: > { %s948_s27 = sadd.s32 4294967295, %s1011_s26   ;;  %p952_p0 = scmp.ge.s32.totalorder %s1011_s26, 1  ;;  %s1011_s26 = sphi %s1057_s26, %s19_s26  }
   0x4   : > { %p239_p1 = scmp.lt.s32.totalorder %s1011_s26, 3 }
   0x6   : > { %p240_p2 = pnand %p952_p0, %p239_p1 }
   0x7   : > { %s953_s6 = sshll.u32 (!%p240_p2), %s948_s27, 1 }
   0x8   : > { %243 = sbr.rel (%p240_p2) target bundleno = 409 (0x199), region = 48  ;;  %p270_p3 = scmp.lt.s32.totalorder (!%p240_p2), %s953_s6, 3 }
   0xd   : > { %v283_v1 = vld [vmem:[%s1293_s1 + $0x20] sm:$0xff]  ;;  %v281_v2 = vld [vmem:[%s1293_s1 + $0x10] sm:$0xff]  ;;  %v1013_v4 = vmov 0   ;;  %v282_v6 = vld [vmem:[%s1293_s1 + $0x18] sm:$0xff]  ;;  %s1301_s6 = smov (!%p270_p3, %s953_s6), 3  ;;  %vm893_vm0 = vcmask 1040384  }
   0xe   : > { %v279_v3 = vld [vmem:[%s1293_s1] sm:$0xff]  ;;  %1004 = vset.pattern.permute.xlu2 %v1013_v4  ;;  %1003 = vset.pattern.permute.xlu1 %v1013_v4  ;;  %v293_v5 = vld [vmem:[%s1293_s1 + $0x70] sm:$0xff]  ;;  %v280_v7 = vld [vmem:[%s1293_s1 + $0x8] sm:$0xff]  ;;  %s272_s14 = scalar_lea.vmem %s1292_s0, %s1301_s6  ;;  %s277_s25 = scalar_lea.vmem %s1299_s7, %s1301_s6 }
   0xf   : > { %1002 = vset.pattern.permute.xlu0 %v1013_v4  ;;  %359 = vperm.xlu2 %1004, %v283_v1   ;;  %v310_v8 = vld [vmem:[%s1294_s2 + $0x78] sm:$0xff]  ;;  %v309_v9 = vld [vmem:[%s1294_s2 + $0x70] sm:$0xff]  ;;  %v307_v11 = vld [vmem:[%s1294_s2 + $0x60] sm:$0xff] }
  0x10   : > { %349 = vperm.xlu1 %1003, %v281_v2   ;;  %339 = vperm.xlu0 %1002, %v279_v3   ;;  %v294_v10 = vld [vmem:[%s1293_s1 + $0x78] sm:$0xff]  ;;  %v292_v12 = vld [vmem:[%s1293_s1 + $0x68] sm:$0xff]  ;;  %v291_v13 = vld [vmem:[%s1293_s1 + $0x60] sm:$0xff] }
  0x11   : > { %v290_v14 = vld [vmem:[%s1293_s1 + $0x58] sm:$0xff]  ;;  %v289_v15 = vld [vmem:[%s1293_s1 + $0x50] sm:$0xff]  ;;  %v308_v16 = vld [vmem:[%s1294_s2 + $0x68] sm:$0xff] }
  0x12   : > { %v287_v17 = vld [vmem:[%s1293_s1 + $0x40] sm:$0xff]  ;;  %v306_v18 = vld [vmem:[%s1294_s2 + $0x58] sm:$0xff]  ;;  %v305_v19 = vld [vmem:[%s1294_s2 + $0x50] sm:$0xff] }
  0x13   : > { %v304_v20 = vld [vmem:[%s1294_s2 + $0x48] sm:$0xff]  ;;  %v303_v21 = vld [vmem:[%s1294_s2 + $0x40] sm:$0xff]  ;;  %v301_v23 = vld [vmem:[%s1294_s2 + $0x30] sm:$0xff] }
  0x14   : > { %v288_v22 = vld [vmem:[%s1293_s1 + $0x48] sm:$0xff]  ;;  %v286_v24 = vld [vmem:[%s1293_s1 + $0x38] sm:$0xff]  ;;  %v285_v25 = vld [vmem:[%s1293_s1 + $0x30] sm:$0xff] }
  0x15   : > { %v299_v26 = vld [vmem:[%s1294_s2 + $0x20] sm:$0xff]  ;;  %v284_v27 = vld [vmem:[%s1293_s1 + $0x28] sm:$0xff]  ;;  %v302_v28 = vld [vmem:[%s1294_s2 + $0x38] sm:$0xff] }
  0x16   : > { %v298_v29 = vld [vmem:[%s1294_s2 + $0x18] sm:$0xff]  ;;  %v297_v30 = vld [vmem:[%s1294_s2 + $0x10] sm:$0xff]  ;;  %v300_v31 = vld [vmem:[%s1294_s2 + $0x28] sm:$0xff] }
  0x17   : > { %409 = vperm.xlu2 %1004, %v293_v5   ;;  %v319_v32 = vld [vmem:[%s1296_s4] sm:$0xff]  ;;  %v296_v33 = vld [vmem:[%s1294_s2 + $0x8] sm:$0xff]  ;;  %v322_v35 = vld [vmem:[%s1296_s4 + $0x18] sm:$0xff] }
  0x18   : > { %354 = vperm.xlu1 %1003, %v282_v6   ;;  %344 = vperm.xlu0 %1002, %v280_v7   ;;  %v295_v34 = vld [vmem:[%s1294_s2] sm:$0xff]  ;;  %v321_v36 = vld [vmem:[%s1296_s4 + $0x10] sm:$0xff]  ;;  %v320_v37 = vld [vmem:[%s1296_s4 + $0x8] sm:$0xff] }
  0x19   : > { %v328_v39 = vld [vmem:[%s1297_s5 + $0x8] sm:$0xff]  ;;  %v327_v40 = vld [vmem:[%s1297_s5] sm:$0xff]  ;;  %v325_v43 = vld [vmem:[%s1296_s4 + $0x30] sm:$0xff] }
  0x1a   : > { %v323_v41 = vld [vmem:[%s1296_s4 + $0x20] sm:$0xff]  ;;  %v329_v44 = vld [vmem:[%s1297_s5 + $0x10] sm:$0xff]  ;;  %v324_v45 = vld [vmem:[%s1296_s4 + $0x28] sm:$0xff] }
  0x1b   : > { %v331_v46 = vld [vmem:[%s1297_s5 + $0x20] sm:$0xff]  ;;  %v326_v48 = vld [vmem:[%s1296_s4 + $0x38] sm:$0xff]  ;;  %v333_v53 = vld [vmem:[%s1297_s5 + $0x30] sm:$0xff] }
  0x1c   : > { %v330_v49 = vld [vmem:[%s1297_s5 + $0x18] sm:$0xff]  ;;  %v332_v54 = vld [vmem:[%s1297_s5 + $0x28] sm:$0xff]  ;;  %v336_v58 = vld [vmem:[%s272_s14] sm:$0x3] }
  0x1d   : > { %v334_v52 = vld [vmem:[%s1297_s5 + $0x38] sm:$0xff]  ;;  %v335_v59 = vld [vmem:[#allocation2] sm:$0x1]  ;;  %v1227_v60 = vperm.slane %v336_v58, 0  ;;  %v1229_v61 = vperm.slane %v336_v58, 1 }
  0x1f   : > { %531 = vperm.xlu2 %1004, %v310_v8  }
  0x20   : > { %526 = vperm.xlu1 %1003, %v309_v9   ;;  %414 = vperm.xlu0 %1002, %v294_v10  }
  0x27   : > { %516 = vperm.xlu2 %1004, %v307_v11  }
  0x28   : > { %404 = vperm.xlu1 %1003, %v292_v12   ;;  %399 = vperm.xlu0 %1002, %v291_v13  }
  0x2f   : > { %394 = vperm.xlu2 %1004, %v290_v14  }
  0x30   : > { %389 = vperm.xlu1 %1003, %v289_v15   ;;  %521 = vperm.xlu0 %1002, %v308_v16  }
  0x37   : > { %379 = vperm.xlu2 %1004, %v287_v17  }
  0x38   : > { %511 = vperm.xlu1 %1003, %v306_v18   ;;  %506 = vperm.xlu0 %1002, %v305_v19  }
  0x3f   : > { %501 = vperm.xlu2 %1004, %v304_v20  }
  0x40   : > { %496 = vperm.xlu1 %1003, %v303_v21   ;;  %384 = vperm.xlu0 %1002, %v288_v22  }
  0x47   : > { %486 = vperm.xlu2 %1004, %v301_v23  }
  0x48   : > { %374 = vperm.xlu1 %1003, %v286_v24   ;;  %369 = vperm.xlu0 %1002, %v285_v25  }
  0x4f   : > { %476 = vperm.xlu2 %1004, %v299_v26  }
  0x50   : > { %364 = vperm.xlu1 %1003, %v284_v27   ;;  %491 = vperm.xlu0 %1002, %v302_v28  }
  0x57   : > { %471 = vperm.xlu2 %1004, %v298_v29  }
  0x58   : > { %466 = vperm.xlu1 %1003, %v297_v30   ;;  %481 = vperm.xlu0 %1002, %v300_v31  }
  0x5f   : > { %648 = vperm.xlu2 %1004, %v319_v32  }
  0x60   : > { %461 = vperm.xlu1 %1003, %v296_v33   ;;  %456 = vperm.xlu0 %1002, %v295_v34  }
  0x67   : > { %663 = vperm.xlu2 %1004, %v322_v35  }
  0x68   : > { %658 = vperm.xlu1 %1003, %v321_v36   ;;  %653 = vperm.xlu0 %1002, %v320_v37  }
  0x69   : > { %v1173_v38 = vpop.permute.xlu2 %359 }
  0x6f   : > { %807 = vperm.xlu2 %1004, %v328_v39  }
  0x70   : > { %802 = vperm.xlu1 %1003, %v327_v40   ;;  %668 = vperm.xlu0 %1002, %v323_v41  }
  0x71   : > { %v410_v42 = vpop.permute.xlu2 %409 }
  0x72   : > { %v450_v62 = vmul.f32 %v1227_v60, %v410_v42  ;;  %v451_v63 = vmul.f32 %v1229_v61, %v410_v42 }
  0x77   : > { %678 = vperm.xlu2 %1004, %v325_v43  }
  0x78   : > { %812 = vperm.xlu1 %1003, %v329_v44   ;;  %673 = vperm.xlu0 %1002, %v324_v45  }
  0x79   : > { %v532_v47 = vpop.permute.xlu2 %531 }
  0x7f   : > { %822 = vperm.xlu2 %1004, %v331_v46  }
  0x80   : > { %683 = vperm.xlu1 %1003, %v326_v48   ;;  %817 = vperm.xlu0 %1002, %v330_v49  }
  0x81   : > { %v517_v55 = vpop.permute.xlu2 %516 }
  0x82   : > { %v1204_v50 = vpop.permute.xlu1 %349  ;;  %v1206_v51 = vpop.permute.xlu0 %339 }
  0x87   : > { %837 = vperm.xlu2 %1004, %v334_v52  }
  0x88   : > { %832 = vperm.xlu1 %1003, %v333_v53   ;;  %827 = vperm.xlu0 %1002, %v332_v54  }
  0x89   : > { %v395_v0 = vpop.permute.xlu2 %394 }
  0x8a   : > { %v1223_v56 = vpop.permute.xlu1 %354  ;;  %v1225_v57 = vpop.permute.xlu0 %344  ;;  %v444_v42 = vmul.f32 %v1227_v60, %v395_v0  ;;  %v445_v43 = vmul.f32 %v1229_v61, %v395_v0 }
  0x90   : > { %884 = vperm.xlu0 %1002, %v335_v59  }
  0x91   : > { %v380_v19 = vpop.permute.xlu2 %379 }
  0x92   : > { %v527_v1 = vpop.permute.xlu1 %526  ;;  %v415_v2 = vpop.permute.xlu0 %414 }
  0x93   : > { %v562_v3 = vadd.f32 %v527_v1, %v450_v62  ;;  %v563_v4 = vadd.f32 %v527_v1, %v451_v63  ;;  %v452_v5 = vmul.f32 %v1227_v60, %v415_v2  ;;  %v453_v6 = vmul.f32 %v1229_v61, %v415_v2 }
  0x95   : > { %v564_v7 = vadd.f32 %v532_v47, %v452_v5  ;;  %v565_v8 = vadd.f32 %v532_v47, %v453_v6  ;;  %v594_v9 = vmul.f32 0.02, %v562_v3  ;;  %v595_v10 = vmul.f32 0.02, %v563_v4 }
  0x96   : > { %v438_v5 = vmul.f32 %v1227_v60, %v380_v19  ;;  %v439_v6 = vmul.f32 %v1229_v61, %v380_v19 }
  0x97   : > { %v596_v11 = vmul.f32 0.02, %v564_v7  ;;  %v597_v12 = vmul.f32 0.02, %v565_v8  ;;  %v626_v17 = vmax.f32 %v562_v3, %v594_v9  ;;  %v627_v18 = vmax.f32 %v563_v4, %v595_v10 }
  0x99   : > { %v628_v13 = vmax.f32 %v564_v7, %v596_v11  ;;  %v629_v14 = vmax.f32 %v565_v8, %v597_v12  ;;  %v502_v34 = vpop.permute.xlu2 %501 }
  0x9a   : > { %v405_v15 = vpop.permute.xlu1 %404  ;;  %v400_v16 = vpop.permute.xlu0 %399 }
  0x9b   : > { %v446_v20 = vmul.f32 %v1227_v60, %v400_v16  ;;  %v447_v21 = vmul.f32 %v1229_v61, %v400_v16  ;;  %v644_v22 = vpack.c.bf16 %v628_v13, %v626_v17  ;;  %v645_v23 = vpack.c.bf16 %v629_v14, %v627_v18 }
  0x9c   : > { %v448_v26 = vmul.f32 %v1227_v60, %v405_v15  ;;  %v449_v27 = vmul.f32 %v1229_v61, %v405_v15 }
  0x9d   : > { %710 = vmatpush.bf16.msra.mxu0 %v644_v22  ;;  %977 = vmatpush.bf16.msra.mxu2 %v644_v22  ;;  %v558_v24 = vadd.f32 %v517_v55, %v446_v20  ;;  %v559_v25 = vadd.f32 %v517_v55, %v447_v21 }
  0x9e   : > { %739 = vmatpush.bf16.msra.mxu1 %v645_v23  ;;  %985 = vmatpush.bf16.msra.mxu3 %v645_v23 }
  0x9f   : > { %v590_v32 = vmul.f32 0.02, %v558_v24  ;;  %v591_v33 = vmul.f32 0.02, %v559_v25 }
  0xa1   : > { %v622_v37 = vmax.f32 %v558_v24, %v590_v32  ;;  %v623_v40 = vmax.f32 %v559_v25, %v591_v33  ;;  %v487_v0 = vpop.permute.xlu2 %486 }
  0xa2   : > { %v390_v28 = vpop.permute.xlu1 %389  ;;  %v522_v29 = vpop.permute.xlu0 %521 }
  0xa3   : > { %v560_v30 = vadd.f32 %v522_v29, %v448_v26  ;;  %v561_v31 = vadd.f32 %v522_v29, %v449_v27  ;;  %v442_v44 = vmul.f32 %v1227_v60, %v390_v28  ;;  %v443_v45 = vmul.f32 %v1229_v61, %v390_v28 }
  0xa5   : > { %v592_v35 = vmul.f32 0.02, %v560_v30  ;;  %v593_v36 = vmul.f32 0.02, %v561_v31 }
  0xa7   : > { %v624_v39 = vmax.f32 %v560_v30, %v592_v35  ;;  %v625_v41 = vmax.f32 %v561_v31, %v593_v36 }
  0xa9   : > { %v642_v46 = vpack.c.bf16 %v624_v39, %v622_v37  ;;  %v643_v47 = vpack.c.bf16 %v625_v41, %v623_v40  ;;  %v477_v21 = vpop.permute.xlu2 %476 }
  0xaa   : > { %v512_v48 = vpop.permute.xlu1 %511  ;;  %v507_v49 = vpop.permute.xlu0 %506 }
  0xab   : > { %v556_v52 = vadd.f32 %v512_v48, %v444_v42  ;;  %v557_v53 = vadd.f32 %v512_v48, %v445_v43  ;;  %v554_v54 = vadd.f32 %v507_v49, %v442_v44  ;;  %v555_v55 = vadd.f32 %v507_v49, %v443_v45  ;;  %711 = vmatpush.bf16.msra.mxu0 %v642_v46 }
  0xac   : > { %978 = vmatpush.bf16.msra.mxu2 %v642_v46  ;;  %740 = vmatpush.bf16.msra.mxu1 %v643_v47  ;;  %v430_v44 = vmul.f32 %v1227_v60, %v1173_v38  ;;  %v428_v45 = vmul.f32 %v1227_v60, %v1223_v56  ;;  %v429_v46 = vmul.f32 %v1229_v61, %v1223_v56 }
  0xad   : > { %v588_v58 = vmul.f32 0.02, %v556_v52  ;;  %v589_v59 = vmul.f32 0.02, %v557_v53  ;;  %v586_v62 = vmul.f32 0.02, %v554_v54  ;;  %986 = vmatpush.bf16.msra.mxu3 %v643_v47  ;;  %v431_v49 = vmul.f32 %v1229_v61, %v1173_v38 }
  0xae   : > { %v587_v63 = vmul.f32 0.02, %v555_v55 }
  0xaf   : > { %v618_v1 = vmax.f32 %v554_v54, %v586_v62  ;;  %v620_v2 = vmax.f32 %v556_v52, %v588_v58  ;;  %v621_v3 = vmax.f32 %v557_v53, %v589_v59  ;;  %v542_v52 = vadd.f32 %v477_v21, %v430_v44 }
  0xb0   : > { %v619_v4 = vmax.f32 %v555_v55, %v587_v63  ;;  %v426_v63 = vmul.f32 %v1227_v60, %v1204_v50 }
  0xb1   : > { %v640_v7 = vpack.c.bf16 %v620_v2, %v618_v1  ;;  %v472_v39 = vpop.permute.xlu2 %471  ;;  %v543_v1 = vadd.f32 %v477_v21, %v431_v49  ;;  %v976_v49 = vld [vmem:[%s1295_s3 + $0x18] sm:$0xff] }
  0xb2   : > { %v497_v8 = vpop.permute.xlu1 %496  ;;  %v385_v9 = vpop.permute.xlu0 %384  ;;  %v641_v10 = vpack.c.bf16 %v621_v3, %v619_v4  ;;  %v540_v53 = vadd.f32 %v472_v39, %v428_v45  ;;  %v541_v54 = vadd.f32 %v472_v39, %v429_v46  ;;  %v574_v4 = vmul.f32 0.02, %v542_v52  ;;  %v973_v46 = vld [vmem:[%s1295_s3] sm:$0xff] }
  0xb3   : > { %v550_v11 = vadd.f32 %v497_v8, %v438_v5  ;;  %v551_v12 = vadd.f32 %v497_v8, %v439_v6  ;;  %v440_v13 = vmul.f32 %v1227_v60, %v385_v9  ;;  %v441_v14 = vmul.f32 %v1229_v61, %v385_v9  ;;  %712 = vmatpush.bf16.msra.mxu0 %v640_v7 }
  0xb4   : > { %979 = vmatpush.bf16.msra.mxu2 %v640_v7  ;;  %741 = vmatpush.bf16.msra.mxu1 %v641_v10  ;;  %v572_v5 = vmul.f32 0.02, %v540_v53  ;;  %v573_v6 = vmul.f32 0.02, %v541_v54 }
  0xb5   : > { %v552_v15 = vadd.f32 %v502_v34, %v440_v13  ;;  %v553_v16 = vadd.f32 %v502_v34, %v441_v14  ;;  %987 = vmatpush.bf16.msra.mxu3 %v641_v10  ;;  %v582_v17 = vmul.f32 0.02, %v550_v11  ;;  %v583_v18 = vmul.f32 0.02, %v551_v12 }
  0xb6   : > { %v575_v13 = vmul.f32 0.02, %v543_v1 }
  0xb7   : > { %v584_v20 = vmul.f32 0.02, %v552_v15  ;;  %v585_v19 = vmul.f32 0.02, %v553_v16  ;;  %v614_v26 = vmax.f32 %v550_v11, %v582_v17  ;;  %v615_v27 = vmax.f32 %v551_v12, %v583_v18 }
  0xb8   : > { %v606_v18 = vmax.f32 %v542_v52, %v574_v4 }
  0xb9   : > { %v616_v22 = vmax.f32 %v552_v15, %v584_v20  ;;  %v617_v23 = vmax.f32 %v553_v16, %v585_v19  ;;  %v422_v16 = vmul.f32 %v1227_v60, %v1206_v51  ;;  %v604_v20 = vmax.f32 %v540_v53, %v572_v5  ;;  %v649_v52 = vpop.permute.xlu2 %648 }
  0xba   : > { %v375_v24 = vpop.permute.xlu1 %374  ;;  %v370_v25 = vpop.permute.xlu0 %369 }
  0xbb   : > { %v434_v28 = vmul.f32 %v1227_v60, %v370_v25  ;;  %v435_v29 = vmul.f32 %v1229_v61, %v370_v25  ;;  %v638_v30 = vpack.c.bf16 %v616_v22, %v614_v26  ;;  %v639_v31 = vpack.c.bf16 %v617_v23, %v615_v27 }
  0xbc   : > { %v436_v34 = vmul.f32 %v1227_v60, %v375_v24  ;;  %v437_v35 = vmul.f32 %v1229_v61, %v375_v24  ;;  %v605_v23 = vmax.f32 %v541_v54, %v573_v6  ;;  %v423_v24 = vmul.f32 %v1229_v61, %v1206_v51 }
  0xbd   : > { %713 = vmatpush.bf16.msra.mxu0 %v638_v30  ;;  %980 = vmatpush.bf16.msra.mxu2 %v638_v30  ;;  %v546_v32 = vadd.f32 %v487_v0, %v434_v28  ;;  %v547_v33 = vadd.f32 %v487_v0, %v435_v29  ;;  %v427_v0 = vmul.f32 %v1229_v61, %v1204_v50 }
  0xbe   : > { %742 = vmatpush.bf16.msra.mxu1 %v639_v31  ;;  %988 = vmatpush.bf16.msra.mxu3 %v639_v31  ;;  %v424_v25 = vmul.f32 %v1227_v60, %v1225_v57  ;;  %v607_v26 = vmax.f32 %v543_v1, %v575_v13  ;;  %v425_v28 = vmul.f32 %v1229_v61, %v1225_v57 }
  0xbf   : > { %v578_v42 = vmul.f32 0.02, %v546_v32  ;;  %v579_v43 = vmul.f32 0.02, %v547_v33 }
  0xc1   : > { %v610_v55 = vmax.f32 %v546_v32, %v578_v42  ;;  %v611_v59 = vmax.f32 %v547_v33, %v579_v43 }
  0xc2   : > { %v365_v36 = vpop.permute.xlu1 %364  ;;  %v492_v37 = vpop.permute.xlu0 %491 }
  0xc3   : > { %v548_v40 = vadd.f32 %v492_v37, %v436_v34  ;;  %v549_v41 = vadd.f32 %v492_v37, %v437_v35  ;;  %v432_v56 = vmul.f32 %v1227_v60, %v365_v36  ;;  %v433_v2 = vmul.f32 %v1229_v61, %v365_v36 }
  0xc5   : > { %v580_v47 = vmul.f32 0.02, %v548_v40  ;;  %v581_v48 = vmul.f32 0.02, %v549_v41 }
  0xc7   : > { %v612_v58 = vmax.f32 %v548_v40, %v580_v47  ;;  %v613_v62 = vmax.f32 %v549_v41, %v581_v48  ;;  %v975_v47 = vld [vmem:[%s1295_s3 + $0x10] sm:$0xff]  ;;  %v974_v48 = vld [vmem:[%s1295_s3 + $0x8] sm:$0xff] }
  0xc9   : > { %v636_v3 = vpack.c.bf16 %v612_v58, %v610_v55  ;;  %v637_v38 = vpack.c.bf16 %v613_v62, %v611_v59  ;;  %v664_v55 = vpop.permute.xlu2 %663 }
  0xca   : > { %v467_v7 = vpop.permute.xlu1 %466  ;;  %v482_v8 = vpop.permute.xlu0 %481 }
  0xcb   : > { %v538_v9 = vadd.f32 %v467_v7, %v426_v63  ;;  %v539_v10 = vadd.f32 %v467_v7, %v427_v0  ;;  %v544_v11 = vadd.f32 %v482_v8, %v432_v56  ;;  %v545_v12 = vadd.f32 %v482_v8, %v433_v2  ;;  %714 = vmatpush.bf16.msra.mxu0 %v636_v3 }
  0xcc   : > { %981 = vmatpush.bf16.msra.mxu2 %v636_v3  ;;  %743 = vmatpush.bf16.msra.mxu1 %v637_v38 }
  0xcd   : > { %v570_v50 = vmul.f32 0.02, %v538_v9  ;;  %v571_v14 = vmul.f32 0.02, %v539_v10  ;;  %v576_v15 = vmul.f32 0.02, %v544_v11  ;;  %989 = vmatpush.bf16.msra.mxu3 %v637_v38 }
  0xce   : > { %v577_v17 = vmul.f32 0.02, %v545_v12 }
  0xcf   : > { %v608_v19 = vmax.f32 %v544_v11, %v576_v15  ;;  %v602_v21 = vmax.f32 %v538_v9, %v570_v50  ;;  %v603_v22 = vmax.f32 %v539_v10, %v571_v14 }
  0xd0   : > { %v609_v27 = vmax.f32 %v545_v12, %v577_v17 }
  0xd1   : > { %v634_v29 = vpack.c.bf16 %v608_v19, %v606_v18  ;;  %v632_v30 = vpack.c.bf16 %v604_v20, %v602_v21  ;;  %v633_v31 = vpack.c.bf16 %v605_v23, %v603_v22  ;;  %v808_v0 = vpop.permute.xlu2 %807 }
  0xd2   : > { %v462_v32 = vpop.permute.xlu1 %461  ;;  %v457_v33 = vpop.permute.xlu0 %456  ;;  %v635_v34 = vpack.c.bf16 %v609_v27, %v607_v26 }
  0xd3   : > { %v536_v35 = vadd.f32 %v462_v32, %v424_v25  ;;  %v537_v36 = vadd.f32 %v462_v32, %v425_v28  ;;  %v534_v37 = vadd.f32 %v457_v33, %v422_v16  ;;  %v535_v39 = vadd.f32 %v457_v33, %v423_v24  ;;  %715 = vmatpush.bf16.msra.mxu0 %v634_v29 }
  0xd4   : > { %982 = vmatpush.bf16.msra.mxu2 %v634_v29  ;;  %744 = vmatpush.bf16.msra.mxu1 %v635_v34 }
  0xd5   : > { %v568_v51 = vmul.f32 0.02, %v536_v35  ;;  %v569_v60 = vmul.f32 0.02, %v537_v36  ;;  %v566_v40 = vmul.f32 0.02, %v534_v37  ;;  %990 = vmatpush.bf16.msra.mxu3 %v635_v34 }
  0xd6   : > { %v567_v41 = vmul.f32 0.02, %v535_v39 }
  0xd7   : > { %716 = vmatpush.bf16.msra.mxu0 %v632_v30  ;;  %v598_v57 = vmax.f32 %v534_v37, %v566_v40  ;;  %v600_v61 = vmax.f32 %v536_v35, %v568_v51  ;;  %v601_v42 = vmax.f32 %v537_v36, %v569_v60 }
  0xd8   : > { %983 = vmatpush.bf16.msra.mxu2 %v632_v30  ;;  %745 = vmatpush.bf16.msra.mxu1 %v633_v31  ;;  %v599_v43 = vmax.f32 %v535_v39, %v567_v41 }
  0xd9   : > { %991 = vmatpush.bf16.msra.mxu3 %v633_v31  ;;  %v630_v44 = vpack.c.bf16 %v600_v61, %v598_v57  ;;  %v679_v14 = vpop.permute.xlu2 %678 }
  0xda   : > { %v631_v45 = vpack.c.bf16 %v601_v42, %v599_v43  ;;  %v654_v53 = vpop.permute.xlu0 %653  ;;  %v659_v54 = vpop.permute.xlu1 %658 }
  0xdb   : > { %717 = vmatpush.bf16.msra.mxu0 %v630_v44 }
  0xdc   : > { %984 = vmatpush.bf16.msra.mxu2 %v630_v44  ;;  %746 = vmatpush.bf16.msra.mxu1 %v631_v45 }
  0xdd   : > { %992 = vmatpush.bf16.msra.mxu3 %v631_v45 }
  0xde   : > { %718 = vmatmul.bf16.vlgmr.msra.gmra.mxu0 %v973_v46 }
  0xdf   : > { %728 = vmatmul.bf16.vlgmr.msra.gmra.mxu2 %v975_v47  ;;  %747 = vmatmul.bf16.vlgmr.msra.gmra.mxu1 %v973_v46 }
  0xe0   : > { %757 = vmatmul.bf16.vlgmr.msra.gmra.mxu3 %v975_v47 }
  0xe1   : > { %v823_v46 = vpop.permute.xlu2 %822 }
  0xe2   : > { %v669_v62 = vpop.permute.xlu0 %668  ;;  %v803_v63 = vpop.permute.xlu1 %802 }
  0xea   : > { %v674_v38 = vpop.permute.xlu0 %673  ;;  %v813_v6 = vpop.permute.xlu1 %812 }
  0xee   : > { %723 = vmatmul.bf16.gmra.mxu0 %v974_v48 }
  0xef   : > { %733 = vmatmul.bf16.gmra.mxu2 %v976_v49  ;;  %752 = vmatmul.bf16.gmra.mxu1 %v974_v48 }
  0xf0   : > { %762 = vmatmul.bf16.gmra.mxu3 %v976_v49 }
  0xf2   : > { %v818_v25 = vpop.permute.xlu0 %817  ;;  %v684_v60 = vpop.permute.xlu1 %683 }
 0x15b   : > { %v719_v58 = vpop.f32.mrf.mxu0 }
 0x15c   : > { %v748_v59 = vpop.f32.mrf.mxu1  ;;  %v720_v7 = vadd.f32 %v719_v58, %v649_v52 }
 0x15d   : > { %v749_v9 = vadd.f32 %v748_v59, %v649_v52 }
 0x15e   : > { %v768_v17 = vmul.f32 0.02, %v720_v7 }
 0x15f   : > { %v769_v20 = vmul.f32 0.02, %v749_v9 }
 0x160   : > { %v784_v26 = vmax.f32 %v720_v7, %v768_v17 }
 0x161   : > { %v785_v30 = vmax.f32 %v749_v9, %v769_v20  ;;  %v833_v20 = vpop.permute.xlu1 %832 }
 0x162   : > { %v729_v1 = vpop.f32.mrf.mxu2  ;;  %v840_v42 = vmul.f32 %v803_v63, %v784_v26  ;;  %v838_v26 = vpop.permute.xlu2 %837 }
 0x163   : > { %v758_v56 = vpop.f32.mrf.mxu3  ;;  %v721_v2 = vpop.f32.mrf.mxu0  ;;  %v730_v21 = vadd.f32 %v729_v1, %v669_v62  ;;  %v841_v47 = vmul.f32 %v803_v63, %v785_v30 }
 0x164   : > { %v750_v3 = vpop.f32.mrf.mxu1  ;;  %v722_v4 = vadd.f32 %v721_v2, %v654_v53  ;;  %v759_v23 = vadd.f32 %v758_v56, %v669_v62 }
 0x165   : > { %v751_v5 = vadd.f32 %v750_v3, %v654_v53  ;;  %v776_v35 = vmul.f32 0.02, %v730_v21 }
 0x166   : > { %v770_v12 = vmul.f32 0.02, %v722_v4  ;;  %v777_v40 = vmul.f32 0.02, %v759_v23 }
 0x167   : > { %v771_v15 = vmul.f32 0.02, %v751_v5  ;;  %v792_v53 = vmax.f32 %v730_v21, %v776_v35 }
 0x168   : > { %v786_v22 = vmax.f32 %v722_v4, %v770_v12  ;;  %v793_v62 = vmax.f32 %v759_v23, %v777_v40  ;;  %v828_v12 = vpop.permute.xlu0 %827 }
 0x169   : > { %v787_v24 = vmax.f32 %v751_v5, %v771_v15  ;;  %v848_v9 = vmul.f32 %v823_v46, %v792_v53 }
 0x16a   : > { %v731_v8 = vpop.f32.mrf.mxu2  ;;  %v842_v36 = vmul.f32 %v808_v0, %v786_v22 }
 0x16b   : > { %v760_v10 = vpop.f32.mrf.mxu3  ;;  %v724_v11 = vpop.f32.mrf.mxu0  ;;  %v732_v27 = vadd.f32 %v731_v8, %v674_v38  ;;  %v843_v41 = vmul.f32 %v808_v0, %v787_v24 }
 0x16c   : > { %v725_v13 = vadd.f32 %v724_v11, %v659_v54  ;;  %v753_v50 = vpop.f32.mrf.mxu1  ;;  %v761_v31 = vadd.f32 %v760_v10, %v674_v38 }
 0x16d   : > { %v754_v16 = vadd.f32 %v753_v50, %v659_v54  ;;  %v778_v43 = vmul.f32 0.02, %v732_v27  ;;  %v856_v54 = vadd.f32 %v842_v36, %v840_v42  ;;  %v869_v1 = vadd.f32 %v843_v41, %v841_v47 }
 0x16e   : > { %v772_v18 = vmul.f32 0.02, %v725_v13  ;;  %v779_v48 = vmul.f32 0.02, %v761_v31 }
 0x16f   : > { %v773_v19 = vmul.f32 0.02, %v754_v16  ;;  %v794_v0 = vmax.f32 %v732_v27, %v778_v43 }
 0x170   : > { %v788_v28 = vmax.f32 %v725_v13, %v772_v18  ;;  %v795_v4 = vmax.f32 %v761_v31, %v779_v48  ;;  %v849_v13 = vmul.f32 %v823_v46, %v793_v62  ;;  %v896_v46 = vlaneseq }
 0x171   : > { %v789_v32 = vmax.f32 %v754_v16, %v773_v19  ;;  %v850_v16 = vmul.f32 %v828_v12, %v794_v0 }
 0x172   : > { %v734_v29 = vpop.f32.mrf.mxu2  ;;  %v844_v44 = vmul.f32 %v813_v6, %v788_v28  ;;  %v851_v19 = vmul.f32 %v828_v12, %v795_v4  ;;  %vm898_vm1 = vcmp.lt.s32.totalorder %v896_v46, 256 }
 0x173   : > { %v763_v33 = vpop.f32.mrf.mxu3  ;;  %v726_v34 = vpop.f32.mrf.mxu0  ;;  %v735_v37 = vadd.f32 %v734_v29, %v679_v14  ;;  %v845_v49 = vmul.f32 %v813_v6, %v789_v32 }
 0x174   : > { %v727_v39 = vadd.f32 %v726_v34, %v664_v55  ;;  %v755_v51 = vpop.f32.mrf.mxu1  ;;  %v764_v57 = vadd.f32 %v763_v33, %v679_v14  ;;  %v857_v3 = vadd.f32 %v856_v54, %v844_v44 }
 0x175   : > { %v756_v61 = vadd.f32 %v755_v51, %v664_v55  ;;  %v780_v58 = vmul.f32 0.02, %v735_v37  ;;  %v870_v5 = vadd.f32 %v869_v1, %v845_v49 }
 0x176   : > { %v774_v45 = vmul.f32 0.02, %v727_v39  ;;  %v781_v56 = vmul.f32 0.02, %v764_v57 }
 0x177   : > { %v775_v52 = vmul.f32 0.02, %v756_v61  ;;  %v796_v6 = vmax.f32 %v735_v37, %v780_v58 }
 0x178   : > { %v790_v59 = vmax.f32 %v727_v39, %v774_v45  ;;  %v797_v50 = vmax.f32 %v764_v57, %v781_v56  ;;  %v885_v57 = vpop.permute.xlu0 %884 }
 0x179   : > { %v791_v2 = vmax.f32 %v756_v61, %v775_v52  ;;  %v852_v23 = vmul.f32 %v833_v20, %v796_v6  ;;  %v887_v43 = vperm.slane %v885_v57, 0 }
 0x17a   : > { %v846_v55 = vmul.f32 %v818_v25, %v790_v59  ;;  %v736_v38 = vpop.f32.mrf.mxu2  ;;  %v853_v27 = vmul.f32 %v833_v20, %v797_v50 }
 0x17b   : > { %v847_v7 = vmul.f32 %v818_v25, %v791_v2  ;;  %v737_v8 = vadd.f32 %v736_v38, %v684_v60  ;;  %v765_v63 = vpop.f32.mrf.mxu3 }
 0x17c   : > { %v858_v10 = vadd.f32 %v857_v3, %v846_v55  ;;  %v766_v11 = vadd.f32 %v765_v63, %v684_v60 }
 0x17d   : > { %v871_v14 = vadd.f32 %v870_v5, %v847_v7  ;;  %v782_v15 = vmul.f32 0.02, %v737_v8 }
 0x17e   : > { %v859_v17 = vadd.f32 %v858_v10, %v848_v9  ;;  %v783_v18 = vmul.f32 0.02, %v766_v11 }
 0x17f   : > { %v872_v21 = vadd.f32 %v871_v14, %v849_v13  ;;  %v798_v22 = vmax.f32 %v737_v8, %v782_v15 }
 0x180   : > { %v860_v24 = vadd.f32 %v859_v17, %v850_v16  ;;  %v799_v25 = vmax.f32 %v766_v11, %v783_v18 }
 0x181   : > { %v873_v28 = vadd.f32 %v872_v21, %v851_v19  ;;  %v854_v29 = vmul.f32 %v838_v26, %v798_v22 }
 0x182   : > { %v861_v30 = vadd.f32 %v860_v24, %v852_v23  ;;  %v855_v31 = vmul.f32 %v838_v26, %v799_v25 }
 0x183   : > { %v874_v32 = vadd.f32 %v873_v28, %v853_v27 }
 0x184   : > { %v862_v33 = vadd.f32 %v861_v30, %v854_v29 }
 0x185   : > { %v875_v34 = vadd.f32 %v874_v32, %v855_v31 }
 0x186   : > { %v863_v35 = vrot.slane %v862_v33, 4 }
 0x187   : > { %v876_v36 = vrot.slane %v875_v34, 4 }
 0x188   : > { %v864_v37 = vadd.f32 %v863_v35, %v862_v33 }
 0x189   : > { %v877_v39 = vadd.f32 %v876_v36, %v875_v34 }
 0x18a   : > { %v865_v51 = vrot.slane %v864_v37, 2 }
 0x18b   : > { %v878_v60 = vrot.slane %v877_v39, 2 }
 0x18c   : > { %v866_v40 = vadd.f32 %v865_v51, %v864_v37 }
 0x18d   : > { %v879_v41 = vadd.f32 %v878_v60, %v877_v39 }
 0x18e   : > { %v867_v61 = vrot.slane %v866_v40, 1 }
 0x18f   : > { %v880_v42 = vrot.slane %v879_v41, 1 }
 0x190   : > { %v868_v44 = vadd.f32 %v867_v61, %v866_v40 }
 0x191   : > { %v881_v45 = vadd.f32 %v880_v42, %v879_v41 }
 0x192   : > { %v888_v48 = vadd.f32 %v887_v43, %v868_v44 }
 0x193   : > { %v889_v47 = vadd.f32 %v887_v43, %v881_v45 }
 0x195   : > { %v892_v49 = vrot.slane %v889_v47, 7 }
 0x197   : > { %v894_v52 = vsel %vm893_vm0, %v888_v48, %v892_v49 }
 0x198   : > { %900 = vst.msk [vmem:[%s277_s25] sm:$0x3] %vm898_vm1, %v894_v52 }
 0x199 PF: > { %s19_s26 = sadd.s32 1, %s1011_s26  }
 0x19a   : > { %p16_p4 = scmp.ge.s32.totalorder %s19_s26, 4  }
 0x19c   :  { %18 = sbr.rel (!%p16_p4) target bundleno = 3 (0x3), region = 78 }

</bundles_post_ra>
